<compile_context>
chip_gen: v6e
topology: v6e:2x2x1
jax: 0.10.0
libtpu: 0.0.40
codegen_flags: <defaults>
</compile_context>

<pallas_src>
import functools

import jax
import jax.numpy as jnp
from jax.experimental import pallas as pl
from jax.experimental.pallas import tpu as pltpu


def _round_up(x: int, m: int) -> int:
    return (x + m - 1) // m * m


def _sublane_multiple(dtype) -> int:
    # Native (sublane, 128) tiling: f32 -> 8, bf16 -> 16, int8/fp8 -> 32.
    return max(8, 32 // jnp.dtype(dtype).itemsize)


def _device_kind() -> str:
    try:
        return jax.devices()[0].device_kind.lower()
    except Exception:
        return ""


def _vmem_capacity_bytes() -> int:
    try:
        cap = int(getattr(pltpu.get_tpu_info(), "vmem_capacity_bytes", 0))
        if cap > 0:
            return cap
    except Exception:
        pass
    kind = _device_kind()
    if "v7" in kind or "tpu7" in kind:
        return 64 << 20       # v7x: 64 MiB per TensorCore
    return 128 << 20          # v5e / v6e: 128 MiB


def _has_two_tensorcores() -> bool:
    kind = _device_kind()
    return "v7" in kind or "tpu7" in kind


def _mlp_kernel(x_ref, wg_ref, wu_ref, wd_ref, o_ref, acc_ref, *, mm_dtype):
    # x_ref:   (tm, H)    token tile
    # wg_ref:  (H, ti)    gate_proj weight tile (in, out)
    # wu_ref:  (H, ti)    up_proj weight tile   (in, out)
    # wd_ref:  (ti, th)   down_proj weight tile (in, out-slice)
    # o_ref:   (tm, th)   output tile (resident across the reduction axis)
    # acc_ref: (tm, th)   f32 VMEM accumulator
    k = pl.program_id(2)

    x = x_ref[...].astype(mm_dtype)
    g = jnp.dot(x, wg_ref[...].astype(mm_dtype),
                preferred_element_type=jnp.float32)
    u = jnp.dot(x, wu_ref[...].astype(mm_dtype),
                preferred_element_type=jnp.float32)
    # SiLU (hidden_act == "silu" for Baichuan) in f32; sigmoid runs on the EUP.
    h = (g * jax.nn.sigmoid(g)) * u
    partial = jnp.dot(h.astype(mm_dtype), wd_ref[...].astype(mm_dtype),
                      preferred_element_type=jnp.float32)

    @pl.when(k == 0)
    def _():
        acc_ref[...] = partial        # direct write: no zero-init + RMW pass

    @pl.when(k > 0)
    def _():
        acc_ref[...] += partial

    @pl.when(k == pl.num_programs(2) - 1)
    def _():
        o_ref[...] = acc_ref[...].astype(o_ref.dtype)


def baichuan_mlp(x, w_gate, w_up, w_down, *, token_tile=None, inter_tile=None,
                 use_bf16_matmul=True):
    """x: (..., hidden). Weights stored (in_features, out_features).

    Computes down_proj(silu(gate_proj(x)) * up_proj(x)); returns (..., hidden).
    With use_bf16_matmul=True (default) and f32 inputs, MXU operands are cast
    to bf16 while accumulation stays f32 (looser-than-f32 tolerance).
    """
    orig_shape = x.shape
    hidden = orig_shape[-1]
    inter = w_gate.shape[1]
    x2 = x.reshape(-1, hidden)
    n_tok = x2.shape[0]

    x_b = jnp.dtype(x.dtype).itemsize
    wg_b = jnp.dtype(w_gate.dtype).itemsize
    wu_b = jnp.dtype(w_up.dtype).itemsize
    wd_b = jnp.dtype(w_down.dtype).itemsize
    out_b = x_b

    capacity = _vmem_capacity_bytes()
    budget = int(capacity * 0.8)          # leave headroom for compiler scratch
    big_vmem = capacity >= (96 << 20)

    sub = _sublane_multiple(x.dtype)
    if token_tile is None:
        token_tile = 512 if big_vmem else 256
    if inter_tile is None:
        inter_tile = 1024 if big_vmem else 512

    i_pad = _round_up(inter, 128)
    tm = min(token_tile, _round_up(n_tok, sub))
    ti = min(inter_tile, i_pad)

    def vmem_need(tm_, ti_, th_):
        return (2 * tm_ * hidden * x_b         # x tile (double-buffered)
                + 2 * hidden * ti_ * wg_b      # gate weight tile
                + 2 * hidden * ti_ * wu_b      # up weight tile
                + 2 * ti_ * th_ * wd_b         # down weight tile
                + 2 * tm_ * th_ * out_b        # output tile
                + tm_ * th_ * 4)               # f32 accumulator

    # Shrink tiles until the pipelined working set fits the VMEM budget
    # (prefer shrinking the reduction tile first, then the token tile).
    for _ in range(32):
        if vmem_need(tm, ti, hidden) <= budget:
            break
        if ti > 256:
            ti //= 2
        elif tm > max(sub, 128):
            tm = max(sub, _round_up(tm // 2, sub))
        elif ti > 128:
            ti //= 2
        elif tm > sub:
            tm = max(sub, _round_up(tm // 2, sub))
        else:
            break

    # Make the reduction tile divide the 128-padded intermediate dim so the
    # weights never need a per-call re-pad for real Baichuan sizes.
    while i_pad % ti:
        ti //= 2
    nk = i_pad // ti

    n_pad = _round_up(n_tok, tm)
    grid_m = n_pad // tm

    # v7x megacore: if the token axis is trivial (decode), split the output
    # hidden dim into 2 parallel blocks so neither TensorCore idles.
    nh = 2 if (grid_m == 1 and hidden % 256 == 0 and _has_two_tensorcores()) else 1
    th = hidden // nh

    if n_pad != n_tok:
        x2 = jnp.pad(x2, ((0, n_pad - n_tok), (0, 0)))
    # TODO(synk): in a real model the 128-granularity intermediate padding is
    # applied once at weight-load time, not per forward call.
    if i_pad != inter:
        w_gate = jnp.pad(w_gate, ((0, 0), (0, i_pad - inter)))
        w_up = jnp.pad(w_up, ((0, 0), (0, i_pad - inter)))
        w_down = jnp.pad(w_down, ((0, i_pad - inter), (0, 0)))

    mm_dtype = jnp.bfloat16 if (use_bf16_matmul and x.dtype == jnp.float32) else x.dtype

    need = vmem_need(tm, ti, th)
    vmem_limit = int(min(capacity, need + (16 << 20)))

    cost = pl.CostEstimate(
        flops=(4 * nh + 2) * n_pad * hidden * i_pad,
        transcendentals=nh * n_pad * i_pad,
        bytes_accessed=(x2.size * x_b
                        + nh * (w_gate.size * wg_b + w_up.size * wu_b)
                        + w_down.size * wd_b
                        + n_pad * hidden * out_b),
    )

    grid = (grid_m, nh, nk)
    out = pl.pallas_call(
        functools.partial(_mlp_kernel, mm_dtype=mm_dtype),
        out_shape=jax.ShapeDtypeStruct((n_pad, hidden), x.dtype),
        grid_spec=pltpu.PrefetchScalarGridSpec(
            num_scalar_prefetch=0,
            grid=grid,
            in_specs=[
                pl.BlockSpec((tm, hidden), lambda i, j, k: (i, 0)),   # x tile
                pl.BlockSpec((hidden, ti), lambda i, j, k: (0, k)),   # Wg tile
                pl.BlockSpec((hidden, ti), lambda i, j, k: (0, k)),   # Wu tile
                pl.BlockSpec((ti, th), lambda i, j, k: (k, j)),       # Wd tile
            ],
            out_specs=pl.BlockSpec((tm, th), lambda i, j, k: (i, j)),
            scratch_shapes=[pltpu.VMEM((tm, th), jnp.float32)],
        ),
        compiler_params=pltpu.CompilerParams(
            dimension_semantics=("parallel", "parallel", "arbitrary"),
            vmem_limit_bytes=vmem_limit,
        ),
        cost_estimate=cost,
    )(x2, w_gate, w_up, w_down)

    if n_pad != n_tok:
        out = out[:n_tok]
    return out.reshape(orig_shape)


def _reference(x, w_gate, w_up, w_down):
    g = x @ w_gate
    u = x @ w_up
    return (jax.nn.silu(g) * u) @ w_down


if __name__ == "__main__":
    # Small, module-consistent shapes: batch=2, seq=8, hidden=32, intermediate=64.
    batch, seq, hidden, intermediate = 2, 8, 32, 64

    key = jax.random.PRNGKey(0)
    kx, kg, ku, kd = jax.random.split(key, 4)

    x = jax.random.normal(kx, (batch, seq, hidden), dtype=jnp.float32)
    # Deterministic "Linear" weights stored (in_features, out_features),
    # i.e. the transpose of PyTorch's (out, in) weight layout.
    w_gate = jax.random.normal(kg, (hidden, intermediate), dtype=jnp.float32) * 0.05
    w_up = jax.random.normal(ku, (hidden, intermediate), dtype=jnp.float32) * 0.05
    w_down = jax.random.normal(kd, (intermediate, hidden), dtype=jnp.float32) * 0.05

    ref = _reference(x, w_gate, w_up, w_down)

    # Exact f32-MXU path.
    out_f32 = jax.block_until_ready(
        baichuan_mlp(x, w_gate, w_up, w_down, use_bf16_matmul=False))
    assert out_f32.shape == (batch, seq, hidden)
    assert jnp.allclose(out_f32, ref, atol=1e-4, rtol=1e-4)

    # Default path: bf16 MXU operands, f32 accumulation (looser tolerance).
    out_bf16 = jax.block_until_ready(baichuan_mlp(x, w_gate, w_up, w_down))
    assert out_bf16.shape == (batch, seq, hidden)
    assert jnp.allclose(out_bf16, ref, atol=2e-2, rtol=2e-2)

    # Padding path: token count not a multiple of the sublane tile.
    x_ragged = jax.random.normal(kx, (1, 5, hidden), dtype=jnp.float32)
    out_r = jax.block_until_ready(
        baichuan_mlp(x_ragged, w_gate, w_up, w_down, use_bf16_matmul=False))
    ref_r = _reference(x_ragged, w_gate, w_up, w_down)
    assert out_r.shape == (1, 5, hidden)
    assert jnp.allclose(out_r, ref_r, atol=1e-4, rtol=1e-4)

    print("KERNEL_OK")
</pallas_src>

<mosaic_0001>
module attributes {stable_mosaic.version = 11 : i64} {
  func.func @_mlp_kernel(%arg0: i32, %arg1: i32, %arg2: i32, %arg3: memref<16x32xf32, #tpu.memory_space<vmem>>, %arg4: memref<32x128xf32, #tpu.memory_space<vmem>>, %arg5: memref<32x128xf32, #tpu.memory_space<vmem>>, %arg6: memref<128x32xf32, #tpu.memory_space<vmem>>, %arg7: memref<16x32xf32, #tpu.memory_space<vmem>>, %arg8: memref<16x32xf32, #tpu.memory_space<vmem>>) attributes {dimension_semantics = [#tpu.dimension_semantics<parallel>, #tpu.dimension_semantics<parallel>, #tpu.dimension_semantics<arbitrary>], iteration_bounds = array<i64: 1, 1, 1>, scalar_prefetch = 0 : i64, scratch_operands = 1 : i64, tpu.core_type = #tpu.core_type<tc>, window_params = [{transform_indices = @transform_0, window_bounds = array<i64: 16, 32>}, {transform_indices = @transform_1, window_bounds = array<i64: 32, 128>}, {transform_indices = @transform_2, window_bounds = array<i64: 32, 128>}, {transform_indices = @transform_3, window_bounds = array<i64: 128, 32>}, {transform_indices = @transform_4, window_bounds = array<i64: 16, 32>}]} {
    %c0 = arith.constant 0 : index
    %c0_0 = arith.constant 0 : index
    %0 = vector.load %arg3[%c0, %c0_0] : memref<16x32xf32, #tpu.memory_space<vmem>>, vector<16x32xf32>
    %c0_1 = arith.constant 0 : index
    %c0_2 = arith.constant 0 : index
    %1 = vector.load %arg4[%c0_1, %c0_2] : memref<32x128xf32, #tpu.memory_space<vmem>>, vector<32x128xf32>
    %cst = arith.constant dense<0.000000e+00> : vector<16x128xf32>
    %2 = tpu.matmul %0, %1, %cst {dimension_numbers = #tpu.dot_dimension_numbers<[1], [0], [0], [1], [0, 0, 1, 1], [], []>} : vector<16x32xf32>, vector<32x128xf32>, vector<16x128xf32> -> vector<16x128xf32>
    %c0_3 = arith.constant 0 : index
    %c0_4 = arith.constant 0 : index
    %3 = vector.load %arg5[%c0_3, %c0_4] : memref<32x128xf32, #tpu.memory_space<vmem>>, vector<32x128xf32>
    %cst_5 = arith.constant dense<0.000000e+00> : vector<16x128xf32>
    %4 = tpu.matmul %0, %3, %cst_5 {dimension_numbers = #tpu.dot_dimension_numbers<[1], [0], [0], [1], [0, 0, 1, 1], [], []>} : vector<16x32xf32>, vector<32x128xf32>, vector<16x128xf32> -> vector<16x128xf32>
    %5 = arith.negf %2 : vector<16x128xf32>
    %6 = math.exp %5 : vector<16x128xf32>
    %cst_6 = arith.constant 1.000000e+00 : f32
    %7 = vector.broadcast %cst_6 : f32 to vector<16x128xf32>
    %8 = arith.addf %7, %6 : vector<16x128xf32>
    %9 = arith.divf %7, %8 : vector<16x128xf32>
    %10 = arith.mulf %2, %9 : vector<16x128xf32>
    %11 = arith.mulf %10, %4 : vector<16x128xf32>
    %c0_7 = arith.constant 0 : index
    %c0_8 = arith.constant 0 : index
    %12 = vector.load %arg6[%c0_7, %c0_8] : memref<128x32xf32, #tpu.memory_space<vmem>>, vector<128x32xf32>
    %cst_9 = arith.constant dense<0.000000e+00> : vector<16x32xf32>
    %13 = tpu.matmul %11, %12, %cst_9 {dimension_numbers = #tpu.dot_dimension_numbers<[1], [0], [0], [1], [0, 0, 1, 1], [], []>} : vector<16x128xf32>, vector<128x32xf32>, vector<16x32xf32> -> vector<16x32xf32>
    %c0_i32 = arith.constant 0 : i32
    %14 = arith.cmpi eq, %arg2, %c0_i32 : i32
    %15 = arith.extui %14 : i1 to i32
    %c0_i32_10 = arith.constant 0 : i32
    %16 = arith.cmpi ne, %15, %c0_i32_10 : i32
    scf.if %16 {
      %c0_15 = arith.constant 0 : index
      %c0_16 = arith.constant 0 : index
      %23 = vector.load %arg8[%c0_15, %c0_16] : memref<16x32xf32, #tpu.memory_space<vmem>>, vector<16x32xf32>
      tpu.vector_store %arg8[%c0_15, %c0_16], %13 {strides = array<i32>} : memref<16x32xf32, #tpu.memory_space<vmem>>, vector<16x32xf32>,
    } else {
    }
    %c0_i32_11 = arith.constant 0 : i32
    %17 = arith.cmpi sgt, %arg2, %c0_i32_11 : i32
    %18 = arith.extui %17 : i1 to i32
    %c0_i32_12 = arith.constant 0 : i32
    %19 = arith.cmpi ne, %18, %c0_i32_12 : i32
    scf.if %19 {
      %c0_15 = arith.constant 0 : index
      %c0_16 = arith.constant 0 : index
      %23 = vector.load %arg8[%c0_15, %c0_16] : memref<16x32xf32, #tpu.memory_space<vmem>>, vector<16x32xf32>
      %24 = arith.addf %23, %13 : vector<16x32xf32>
      %c0_17 = arith.constant 0 : index
      %c0_18 = arith.constant 0 : index
      %25 = vector.load %arg8[%c0_17, %c0_18] : memref<16x32xf32, #tpu.memory_space<vmem>>, vector<16x32xf32>
      tpu.vector_store %arg8[%c0_17, %c0_18], %24 {strides = array<i32>} : memref<16x32xf32, #tpu.memory_space<vmem>>, vector<16x32xf32>,
    } else {
    }
    %c0_i32_13 = arith.constant 0 : i32
    %20 = arith.cmpi eq, %arg2, %c0_i32_13 : i32
    %21 = arith.extui %20 : i1 to i32
    %c0_i32_14 = arith.constant 0 : i32
    %22 = arith.cmpi ne, %21, %c0_i32_14 : i32
    scf.if %22 {
      %c0_15 = arith.constant 0 : index
      %c0_16 = arith.constant 0 : index
      %23 = vector.load %arg8[%c0_15, %c0_16] : memref<16x32xf32, #tpu.memory_space<vmem>>, vector<16x32xf32>
      %c0_17 = arith.constant 0 : index
      %c0_18 = arith.constant 0 : index
      %24 = vector.load %arg7[%c0_17, %c0_18] : memref<16x32xf32, #tpu.memory_space<vmem>>, vector<16x32xf32>
      tpu.vector_store %arg7[%c0_17, %c0_18], %23 {strides = array<i32>} : memref<16x32xf32, #tpu.memory_space<vmem>>, vector<16x32xf32>,
    } else {
    }
    return
  }
  func.func @transform_0(%arg0: i32, %arg1: i32, %arg2: i32) -> (i32, i32) {
    %c0_i32 = arith.constant 0 : i32
    %c0_i32_0 = arith.constant 0 : i32
    return %arg0, %c0_i32 : i32, i32
  }
  func.func @transform_1(%arg0: i32, %arg1: i32, %arg2: i32) -> (i32, i32) {
    %c0_i32 = arith.constant 0 : i32
    %c0_i32_0 = arith.constant 0 : i32
    return %c0_i32, %arg2 : i32, i32
  }
  func.func @transform_2(%arg0: i32, %arg1: i32, %arg2: i32) -> (i32, i32) {
    %c0_i32 = arith.constant 0 : i32
    %c0_i32_0 = arith.constant 0 : i32
    return %c0_i32, %arg2 : i32, i32
  }
  func.func @transform_3(%arg0: i32, %arg1: i32, %arg2: i32) -> (i32, i32) {
    %c0_i32 = arith.constant 0 : i32
    return %arg2, %arg1 : i32, i32
  }
  func.func @transform_4(%arg0: i32, %arg1: i32, %arg2: i32) -> (i32, i32) {
    %c0_i32 = arith.constant 0 : i32
    return %arg0, %arg1 : i32, i32
  }
}

</mosaic_0001>

<bundles_post_ra>
// kernel: tpu_custom_call.1
= control target key start
LH: loop header
LB: loop body
LE: loop exit
PB: predicated region body
PF: predicated region fallthrough
CT: control target
= control target key end

     0   :  { %vm24_vm0 = vcmask 261120   ;;  %s574_s0 = inlined_call_operand.vmem [shape: f32[16,32], index: 0, kind: input, shape index: {}]   ;;  %s575_s1 = inlined_call_operand.vmem [shape: f32[32,128], index: 1, kind: input, shape index: {}]   ;;  %s576_s2 = inlined_call_operand.vmem [shape: f32[32,128], index: 2, kind: input, shape index: {}]   ;;  %s577_s3 = inlined_call_operand.vmem [shape: f32[128,32], index: 3, kind: input, shape index: {}]   ;;  %s578_s4 = inlined_call_operand.hbm [shape: f32[16,32], index: 4, kind: output, shape index: {}]  }
   0x1   :  { %v23_v0 = vld [vmem:[%s575_s1 + $0x18] sm:$0xff]  ;;  %v22_v1 = vld [vmem:[%s575_s1 + $0x10] sm:$0xff]  ;;  %v18_v2 = vld [vmem:[%s574_s0] sm:$0xff] }
   0x2   :  { %367 = vmatprep.subr.mxu1 %v23_v0  ;;  %v21_v3 = vld [vmem:[%s575_s1 + $0x8] sm:$0xff]  ;;  %375 = vmatprep.mubr.msk.f32.mxu1 %vm24_vm0, %v18_v2 }
   0x3   :  { %368 = vmatpush3.msra.mxu1 %v23_v0 }
   0x4   :  { %369 = vmatprep.subr.mxu1 %v22_v1 }
   0x5   :  { %9 = vsyncpa [#allocation4], 0  ;;  %370 = vmatpush3.msra.mxu1 %v22_v1  ;;  %v20_v4 = vld [vmem:[%s575_s1] sm:$0xff]  ;;  %v19_v5 = vld [vmem:[%s574_s0 + $0x8] sm:$0xff] }
   0x6   :  { %371 = vmatprep.subr.mxu1 %v21_v3  ;;  %v109_v6 = vld [vmem:[%s576_s2 + $0x18] sm:$0xff]  ;;  %v108_v7 = vld [vmem:[%s576_s2 + $0x10] sm:$0xff]  ;;  %v107_v8 = vld [vmem:[%s576_s2 + $0x8] sm:$0xff] }
   0x7   :  { %372 = vmatpush3.msra.mxu1 %v21_v3  ;;  %v106_v9 = vld [vmem:[%s576_s2] sm:$0xff]  ;;  %v216_v10 = vld [vmem:[%s577_s3 + $0x78] sm:$0xff]  ;;  %v215_v11 = vld [vmem:[%s577_s3 + $0x70] sm:$0xff] }
   0x8   :  { %373 = vmatprep.subr.mxu1 %v20_v4  ;;  %389 = vmatprep.subr.mxu0 %v216_v10  ;;  %v214_v12 = vld [vmem:[%s577_s3 + $0x68] sm:$0xff]  ;;  %v213_v13 = vld [vmem:[%s577_s3 + $0x60] sm:$0xff]  ;;  %v212_v14 = vld [vmem:[%s577_s3 + $0x58] sm:$0xff] }
   0x9   :  { %374 = vmatpush3.msra.mxu1 %v20_v4  ;;  %390 = vmatpush3.msra.mxu0 %v216_v10  ;;  %v211_v15 = vld [vmem:[%s577_s3 + $0x50] sm:$0xff]  ;;  %v210_v16 = vld [vmem:[%s577_s3 + $0x48] sm:$0xff]  ;;  %v209_v17 = vld [vmem:[%s577_s3 + $0x40] sm:$0xff] }
   0xa   :  { %376 = vmatmul.mubr.msk.f32.vlgmr.msra.gmra.mxu1 %vm24_vm0, %v19_v5  ;;  %378 = vmatprep.subr.mxu1 %v109_v6  ;;  %v208_v18 = vld [vmem:[%s577_s3 + $0x38] sm:$0xff]  ;;  %v207_v19 = vld [vmem:[%s577_s3 + $0x30] sm:$0xff]  ;;  %v206_v20 = vld [vmem:[%s577_s3 + $0x28] sm:$0xff] }
   0xb   :  { %379 = vmatpush3.msra.mxu1 %v109_v6  ;;  %386 = vmatprep.mubr.msk.f32.mxu1 %vm24_vm0, %v18_v2  ;;  %v205_v21 = vld [vmem:[%s577_s3 + $0x20] sm:$0xff]  ;;  %v204_v22 = vld [vmem:[%s577_s3 + $0x18] sm:$0xff]  ;;  %v203_v23 = vld [vmem:[%s577_s3 + $0x10] sm:$0xff] }
   0xc   :  { %380 = vmatprep.subr.mxu1 %v108_v7  ;;  %391 = vmatprep.subr.mxu0 %v215_v11  ;;  %v202_v24 = vld [vmem:[%s577_s3 + $0x8] sm:$0xff]  ;;  %v201_v25 = vld [vmem:[%s577_s3] sm:$0xff]  ;;  %s457_s3 = smov [#allocation3]  }
   0xd   :  { %381 = vmatpush3.msra.mxu1 %v108_v7  ;;  %392 = vmatpush3.msra.mxu0 %v215_v11  ;;  %s320_s10 = sshll.u32 %s457_s3, 4  ;;  %s321_s10 = int_to_ptr.vmem [resolvable:$true] %s320_s10 }
   0xe   :  { %382 = vmatprep.subr.mxu1 %v107_v8  ;;  %393 = vmatprep.subr.mxu0 %v214_v12  ;;  %s435_s11 = scalar_lea.vmem %s321_s10, 256  ;;  %p440_p1 = scmp.lt.s32.totalorder %s321_s10, %s321_s10 }
   0xf   :  { %383 = vmatpush3.msra.mxu1 %v107_v8  ;;  %394 = vmatpush3.msra.mxu0 %v214_v12  ;;  %p436_p0 = scmp.ne.s32.totalorder %s321_s10, %s435_s11  ;;  %p441_p2 = scmp.lt.s32.totalorder %s435_s11, %s435_s11 }
  0x10   :  { %384 = vmatprep.subr.mxu1 %v106_v9  ;;  %395 = vmatprep.subr.mxu0 %v213_v13 }
  0x11   :  { %385 = vmatpush3.msra.mxu1 %v106_v9  ;;  %396 = vmatpush3.msra.mxu0 %v213_v13  ;;  %p442_p3 = por %p441_p2, %p440_p1 }
  0x12   :  { %387 = vmatmul.mubr.msk.f32.vlgmr.msra.gmra.mxu1 %vm24_vm0, %v19_v5  ;;  %397 = vmatprep.subr.mxu0 %v212_v14 }
  0x13   :  { %398 = vmatpush3.msra.mxu0 %v212_v14  ;;  %p443_p4 = pnand %p442_p3, %p436_p0 }
  0x14   :  { %399 = vmatprep.subr.mxu0 %v211_v15 }
  0x15   :  { %400 = vmatpush3.msra.mxu0 %v211_v15 }
  0x16   :  { %401 = vmatprep.subr.mxu0 %v210_v16 }
  0x17   :  { %402 = vmatpush3.msra.mxu0 %v210_v16 }
  0x18   :  { %403 = vmatprep.subr.mxu0 %v209_v17 }
  0x19   :  { %404 = vmatpush3.msra.mxu0 %v209_v17 }
  0x1a   :  { %405 = vmatprep.subr.mxu0 %v208_v18 }
  0x1b   :  { %406 = vmatpush3.msra.mxu0 %v208_v18 }
  0x1c   :  { %407 = vmatprep.subr.mxu0 %v207_v19 }
  0x1d   :  { %408 = vmatpush3.msra.mxu0 %v207_v19 }
  0x1e   :  { %409 = vmatprep.subr.mxu0 %v206_v20 }
  0x1f   :  { %410 = vmatpush3.msra.mxu0 %v206_v20 }
  0x20   :  { %411 = vmatprep.subr.mxu0 %v205_v21 }
  0x21   :  { %412 = vmatpush3.msra.mxu0 %v205_v21 }
  0x22   :  { %413 = vmatprep.subr.mxu0 %v204_v22 }
  0x23   :  { %414 = vmatpush3.msra.mxu0 %v204_v22 }
  0x24   :  { %415 = vmatprep.subr.mxu0 %v203_v23 }
  0x25   :  { %416 = vmatpush3.msra.mxu0 %v203_v23 }
  0x26   :  { %417 = vmatprep.subr.mxu0 %v202_v24 }
  0x27   :  { %418 = vmatpush3.msra.mxu0 %v202_v24 }
  0x28   :  { %419 = vmatprep.subr.mxu0 %v201_v25 }
  0x29   :  { %420 = vmatpush3.msra.mxu0 %v201_v25 }
  0xca   :  { %v377_v26 = vpop.f32.mrf.mxu1 }
  0xcb   :  { %v336_v27 = vmul.f32 -1.442695, %v377_v26 }
  0xcc   :  { %v97_v28 = vpop.f32.mrf.mxu1 }
  0xcd   :  { %427 = vpow2.f32 %v336_v27  ;;  %v335_v29 = vmul.f32 -1.442695, %v97_v28 }
  0xcf   :  { %429 = vpow2.f32 %v335_v29 }
  0xd2   :  { %v388_v35 = vpop.f32.mrf.mxu1 }
  0xd4   :  { %v176_v39 = vpop.f32.mrf.mxu1 }
  0xda   :  { %v428_v30 = vpop.eup %427 }
  0xdb   :  { %v192_v31 = vadd.f32 1.0, %v428_v30 }
  0xdc   :  { %v430_v32 = vpop.eup %429 }
  0xdd   :  { %431 = vrcp.f32 %v192_v31  ;;  %v191_v33 = vadd.f32 1.0, %v430_v32 }
  0xdf   :  { %433 = vrcp.f32 %v191_v33 }
  0xea   :  { %v432_v34 = vpop.eup %431 }
  0xeb   :  { %v198_v37 = vmul.f32 %v432_v34, %v377_v26 }
  0xec   :  { %v434_v36 = vpop.eup %433 }
  0xed   :  { %v197_v38 = vmul.f32 %v434_v36, %v97_v28  ;;  %v200_v41 = vmul.f32 %v388_v35, %v198_v37 }
  0xef   :  { %v199_v40 = vmul.f32 %v197_v38, %v176_v39 }
  0xf1   :  { %421 = vmatprep.mubr.f32.mxu0 %v199_v40 }
  0xf2   :  { %422 = vmatmul.mubr.f32.vlgmr.msra.gmra.mxu0 %v200_v41 }
 0x1b2   :  { %v423_v42 = vpop.f32.mrf.mxu0 }
 0x1b3   :  { %297 = vst.msk [vmem:[#allocation2 + $0x8] sm:$0xff] %vm24_vm0, %v423_v42 }
 0x1b4   :  { %v283_v43 = vpop.f32.mrf.mxu0 }
 0x1b5   :  { %296 = vst.msk [vmem:[#allocation2] sm:$0xff] %vm24_vm0, %v283_v43 }
 0x1ba   :  { %v312_v44 = vld [vmem:[#allocation2 + $0x8] sm:$0xff] }
 0x1bb   :  { %314 = vst.msk [vmem:[#allocation3 + $0x8] sm:$0xff] %vm24_vm0, %v312_v44 }
 0x1bc   :  { %v311_v45 = vld [vmem:[#allocation2] sm:$0xff] }
 0x1bd   :  { %313 = vst.msk [vmem:[#allocation3] sm:$0xff] %vm24_vm0, %v311_v45 }
 0x1be   :  { %446 = shalt.err (!%p443_p4)
}
 0x1bf   :  { %s458_s2 = smov 128   ;;  %s459_s12 = smov 8  }
 0x1c0   :  { %326 = dma.vmem_to_hbm [thread:$0]  %s321_s10, 256, %s578_s4, [#allocation4], %s458_s2, %s458_s2, %s459_s12  }
 0x1c1   :  { %455 = dma.done.wait [#allocation4], 256  }
 0x1c2   :  { %456 = vsyncadd [#allocation4], 4294967040 }
 0x1c3   :  { %330 = vsyncpa [#allocation4], 1 }

</bundles_post_ra>
